<compile_context>
chip_gen: v7x
topology: tpu7x:2x2x1
jax: 0.10.0
libtpu: 0.0.40
codegen_flags: <defaults>
</compile_context>

<pallas_src>
import jax
import jax.numpy as jnp
from jax.experimental import pallas as pl
from jax.experimental.pallas import tpu as pltpu

LOG_SIG_MAX = 2.0
LOG_SIG_MIN = -20.0
HIDDEN = 256


def _round_up(x, m):
    return ((x + m - 1) // m) * m


def actor_fwd_kernel(x_ref, w1_ref, b1_ref, w2_ref, b2_ref,
                     w3_ref, b3_ref, w4_ref, b4_ref,
                     mean_ref, log_std_ref):
    # x: [tile_b, state_dim] f32 (raw, unpadded K) -> bf16 for the MXU in-kernel.
    x = x_ref[...].astype(jnp.bfloat16)

    h1 = jnp.dot(x, w1_ref[...], preferred_element_type=jnp.float32) + b1_ref[...]
    h1 = jnp.maximum(h1, 0.0).astype(jnp.bfloat16)          # ReLU in f32, bf16 for MXU

    h2 = jnp.dot(h1, w2_ref[...], preferred_element_type=jnp.float32) + b2_ref[...]
    h2 = jnp.maximum(h2, 0.0).astype(jnp.bfloat16)

    mean = jnp.dot(h2, w3_ref[...], preferred_element_type=jnp.float32) + b3_ref[...]
    mean_ref[...] = mean.astype(mean_ref.dtype)

    log_std = jnp.dot(h2, w4_ref[...], preferred_element_type=jnp.float32) + b4_ref[...]
    log_std_ref[...] = jnp.clip(log_std, LOG_SIG_MIN, LOG_SIG_MAX).astype(log_std_ref.dtype)


def pack_actor_params(p):
    """One-time prep: cast matmul weights to bf16, keep biases in f32 (row vectors)."""
    return dict(
        w1=p["w1"].astype(jnp.bfloat16),
        b1=p["b1"].reshape(1, -1).astype(jnp.float32),
        w2=p["w2"].astype(jnp.bfloat16),
        b2=p["b2"].reshape(1, -1).astype(jnp.float32),
        w3=p["w3"].astype(jnp.bfloat16),
        b3=p["b3"].reshape(1, -1).astype(jnp.float32),
        w4=p["w4"].astype(jnp.bfloat16),
        b4=p["b4"].reshape(1, -1).astype(jnp.float32),
    )


def actor_forward(state, packed, *, tile_b=None):
    """state: [B, state_dim] f32 -> (mean [B, A] f32, log_std [B, A] f32)."""
    B, state_dim = state.shape
    action_dim = packed["w3"].shape[1]

    if tile_b is None:
        # Large tiles amortize the ~0.35 us per-grid-step overhead; cdiv(B, 2)
        # guarantees >=2 grid steps once the batch is big enough so the
        # "parallel" batch axis splits across both v7x TensorCores; multiple of
        # 16 keeps bf16 sublane packing happy.
        tile_b = min(2048, max(16, _round_up(pl.cdiv(B, 2), 16)))
    assert tile_b % 16 == 0, "tile_b must be a multiple of 16 (bf16 sublane packing)"

    B_pad = pl.cdiv(B, tile_b) * tile_b
    # Only pad the batch axis (zeros), and only when needed. No K-pad, no cast.
    x = state if B_pad == B else jnp.pad(state, ((0, B_pad - B), (0, 0)))

    grid = (B_pad // tile_b,)

    flops = 2 * B_pad * (state_dim * HIDDEN + HIDDEN * HIDDEN + 2 * HIDDEN * action_dim)
    bytes_accessed = (
        B_pad * state_dim * 4                                                   # raw state (f32)
        + (state_dim * HIDDEN + HIDDEN * HIDDEN + 2 * HIDDEN * action_dim) * 2  # weights (bf16)
        + (2 * HIDDEN + 2 * action_dim) * 4                                     # biases (f32)
        + 2 * B_pad * action_dim * 4                                            # mean + log_std (f32)
    )

    pinned = lambda i: (0, 0)      # weights/biases: resident in VMEM across all tiles
    streamed = lambda i: (i, 0)    # state / outputs: streamed over the batch

    mean, log_std = pl.pallas_call(
        actor_fwd_kernel,
        out_shape=(
            jax.ShapeDtypeStruct((B_pad, action_dim), jnp.float32),
            jax.ShapeDtypeStruct((B_pad, action_dim), jnp.float32),
        ),
        grid_spec=pltpu.PrefetchScalarGridSpec(
            num_scalar_prefetch=0,
            grid=grid,
            in_specs=[
                pl.BlockSpec((tile_b, state_dim), streamed),   # raw f32 state tile
                pl.BlockSpec((state_dim, HIDDEN), pinned),     # W1 (unpadded K)
                pl.BlockSpec((1, HIDDEN), pinned),             # b1
                pl.BlockSpec((HIDDEN, HIDDEN), pinned),        # W2
                pl.BlockSpec((1, HIDDEN), pinned),             # b2
                pl.BlockSpec((HIDDEN, action_dim), pinned),    # W3
                pl.BlockSpec((1, action_dim), pinned),         # b3
                pl.BlockSpec((HIDDEN, action_dim), pinned),    # W4
                pl.BlockSpec((1, action_dim), pinned),         # b4
            ],
            out_specs=(
                pl.BlockSpec((tile_b, action_dim), streamed),  # mean
                pl.BlockSpec((tile_b, action_dim), streamed),  # log_std
            ),
        ),
        compiler_params=pltpu.CompilerParams(
            dimension_semantics=("parallel",),      # batch tiles shard across TCs on v7x
            vmem_limit_bytes=32 * 1024 * 1024,      # plenty of headroom on every generation
        ),
        cost_estimate=pl.CostEstimate(
            flops=flops, transcendentals=0, bytes_accessed=bytes_accessed),
    )(x, packed["w1"], packed["b1"], packed["w2"], packed["b2"],
      packed["w3"], packed["b3"], packed["w4"], packed["b4"])

    if B_pad != B:
        mean, log_std = mean[:B], log_std[:B]
    return mean, log_std


def init_actor_params(key, state_dim, action_dim):
    """Deterministic init mimicking nn.Linear default (U[-1/sqrt(fan_in), +])."""
    def linear(key, fan_in, fan_out):
        kw, kb = jax.random.split(key)
        bound = 1.0 / jnp.sqrt(fan_in)
        w = jax.random.uniform(kw, (fan_in, fan_out), jnp.float32, -bound, bound)
        b = jax.random.uniform(kb, (1, fan_out), jnp.float32, -bound, bound)
        return w, b

    k1, k2, k3, k4 = jax.random.split(key, 4)
    w1, b1 = linear(k1, state_dim, HIDDEN)
    w2, b2 = linear(k2, HIDDEN, HIDDEN)
    w3, b3 = linear(k3, HIDDEN, action_dim)
    w4, b4 = linear(k4, HIDDEN, action_dim)
    return dict(w1=w1, b1=b1, w2=w2, b2=b2, w3=w3, b3=b3, w4=w4, b4=b4)


def actor_forward_ref_bf16(state, p):
    """Pure-JAX reference emulating the kernel's bf16-input / f32-accum matmuls."""
    def mm(a, w):
        return jnp.dot(a.astype(jnp.bfloat16), w.astype(jnp.bfloat16),
                       preferred_element_type=jnp.float32)
    h1 = jnp.maximum(mm(state, p["w1"]) + p["b1"], 0.0)
    h2 = jnp.maximum(mm(h1, p["w2"]) + p["b2"], 0.0)
    mean = mm(h2, p["w3"]) + p["b3"]
    log_std = jnp.clip(mm(h2, p["w4"]) + p["b4"], LOG_SIG_MIN, LOG_SIG_MAX)
    return mean, log_std


def actor_forward_ref_f32(state, p):
    h1 = jnp.maximum(state @ p["w1"] + p["b1"], 0.0)
    h2 = jnp.maximum(h1 @ p["w2"] + p["b2"], 0.0)
    mean = h2 @ p["w3"] + p["b3"]
    log_std = jnp.clip(h2 @ p["w4"] + p["b4"], LOG_SIG_MIN, LOG_SIG_MAX)
    return mean, log_std


if __name__ == "__main__":
    key = jax.random.PRNGKey(0)
    k_params, k_state = jax.random.split(key)

    batch, state_dim, action_dim = 2, 16, 4
    params = init_actor_params(k_params, state_dim, action_dim)
    state = jax.random.normal(k_state, (batch, state_dim), jnp.float32)

    packed = pack_actor_params(params)
    mean, log_std = jax.block_until_ready(actor_forward(state, packed))

    assert mean.shape == (batch, action_dim) and log_std.shape == (batch, action_dim)

    # Exact-path check vs bf16-emulated reference (same MXU dtype pipeline).
    mean_b, log_std_b = actor_forward_ref_bf16(state, params)
    assert jnp.allclose(mean, mean_b, atol=1e-2, rtol=1e-2)
    assert jnp.allclose(log_std, log_std_b, atol=1e-2, rtol=1e-2)

    # Loose sanity check vs the full-f32 reference (bf16 quantization error only).
    mean_f, log_std_f = actor_forward_ref_f32(state, params)
    assert jnp.allclose(mean, mean_f, atol=5e-2, rtol=5e-2)
    assert jnp.allclose(log_std, log_std_f, atol=5e-2, rtol=5e-2)

    # TODO(synk): Actor.sample (Normal.rsample / tanh-squashed log_prob) is a
    # stochastic path outside forward(); only forward() is implemented here.
    print("KERNEL_OK")
</pallas_src>

<mosaic_0001>
module attributes {stable_mosaic.version = 11 : i64} {
  func.func @actor_fwd_kernel(%arg0: i32, %arg1: memref<16x16xf32, #tpu.memory_space<vmem>>, %arg2: memref<16x256xbf16, #tpu.memory_space<vmem>>, %arg3: memref<1x256xf32, #tpu.memory_space<vmem>>, %arg4: memref<256x256xbf16, #tpu.memory_space<vmem>>, %arg5: memref<1x256xf32, #tpu.memory_space<vmem>>, %arg6: memref<256x4xbf16, #tpu.memory_space<vmem>>, %arg7: memref<1x4xf32, #tpu.memory_space<vmem>>, %arg8: memref<256x4xbf16, #tpu.memory_space<vmem>>, %arg9: memref<1x4xf32, #tpu.memory_space<vmem>>, %arg10: memref<16x4xf32, #tpu.memory_space<vmem>>, %arg11: memref<16x4xf32, #tpu.memory_space<vmem>>) attributes {dimension_semantics = [#tpu.dimension_semantics<parallel>], iteration_bounds = array<i64: 1>, scalar_prefetch = 0 : i64, scratch_operands = 0 : i64, tpu.core_type = #tpu.core_type<tc>, window_params = [{transform_indices = @transform_0, window_bounds = array<i64: 16, 16>}, {pipeline_mode = #tpu.pipeline_mode<synchronous>, transform_indices = @transform_1, window_bounds = array<i64: 16, 256>}, {pipeline_mode = #tpu.pipeline_mode<synchronous>, transform_indices = @transform_2, window_bounds = array<i64: 1, 256>}, {pipeline_mode = #tpu.pipeline_mode<synchronous>, transform_indices = @transform_3, window_bounds = array<i64: 256, 256>}, {pipeline_mode = #tpu.pipeline_mode<synchronous>, transform_indices = @transform_4, window_bounds = array<i64: 1, 256>}, {pipeline_mode = #tpu.pipeline_mode<synchronous>, transform_indices = @transform_5, window_bounds = array<i64: 256, 4>}, {pipeline_mode = #tpu.pipeline_mode<synchronous>, transform_indices = @transform_6, window_bounds = array<i64: 1, 4>}, {pipeline_mode = #tpu.pipeline_mode<synchronous>, transform_indices = @transform_7, window_bounds = array<i64: 256, 4>}, {pipeline_mode = #tpu.pipeline_mode<synchronous>, transform_indices = @transform_8, window_bounds = array<i64: 1, 4>}, {transform_indices = @transform_9, window_bounds = array<i64: 16, 4>}, {transform_indices = @transform_10, window_bounds = array<i64: 16, 4>}]} {
    %c0 = arith.constant 0 : index
    %c0_0 = arith.constant 0 : index
    %0 = vector.load %arg1[%c0, %c0_0] : memref<16x16xf32, #tpu.memory_space<vmem>>, vector<16x16xf32>
    %1 = arith.truncf %0 : vector<16x16xf32> to vector<16x16xbf16>
    %c0_1 = arith.constant 0 : index
    %c0_2 = arith.constant 0 : index
    %2 = vector.load %arg2[%c0_1, %c0_2] : memref<16x256xbf16, #tpu.memory_space<vmem>>, vector<16x256xbf16>
    %cst = arith.constant dense<0.000000e+00> : vector<16x256xf32>
    %3 = tpu.matmul %1, %2, %cst {dimension_numbers = #tpu.dot_dimension_numbers<[1], [0], [0], [1], [0, 0, 1, 1], [], []>} : vector<16x16xbf16>, vector<16x256xbf16>, vector<16x256xf32> -> vector<16x256xf32>
    %c0_3 = arith.constant 0 : index
    %c0_4 = arith.constant 0 : index
    %4 = vector.load %arg3[%c0_3, %c0_4] : memref<1x256xf32, #tpu.memory_space<vmem>>, vector<1x256xf32>
    %5 = vector.broadcast %4 : vector<1x256xf32> to vector<16x256xf32>
    %6 = arith.addf %3, %5 : vector<16x256xf32>
    %cst_5 = arith.constant 0.000000e+00 : f32
    %7 = vector.broadcast %cst_5 : f32 to vector<16x256xf32>
    %8 = arith.maximumf %6, %7 : vector<16x256xf32>
    %9 = arith.truncf %8 : vector<16x256xf32> to vector<16x256xbf16>
    %c0_6 = arith.constant 0 : index
    %c0_7 = arith.constant 0 : index
    %10 = vector.load %arg4[%c0_6, %c0_7] : memref<256x256xbf16, #tpu.memory_space<vmem>>, vector<256x256xbf16>
    %cst_8 = arith.constant dense<0.000000e+00> : vector<16x256xf32>
    %11 = tpu.matmul %9, %10, %cst_8 {dimension_numbers = #tpu.dot_dimension_numbers<[1], [0], [0], [1], [0, 0, 1, 1], [], []>} : vector<16x256xbf16>, vector<256x256xbf16>, vector<16x256xf32> -> vector<16x256xf32>
    %c0_9 = arith.constant 0 : index
    %c0_10 = arith.constant 0 : index
    %12 = vector.load %arg5[%c0_9, %c0_10] : memref<1x256xf32, #tpu.memory_space<vmem>>, vector<1x256xf32>
    %13 = vector.broadcast %12 : vector<1x256xf32> to vector<16x256xf32>
    %14 = arith.addf %11, %13 : vector<16x256xf32>
    %cst_11 = arith.constant 0.000000e+00 : f32
    %15 = vector.broadcast %cst_11 : f32 to vector<16x256xf32>
    %16 = arith.maximumf %14, %15 : vector<16x256xf32>
    %17 = arith.truncf %16 : vector<16x256xf32> to vector<16x256xbf16>
    %c0_12 = arith.constant 0 : index
    %c0_13 = arith.constant 0 : index
    %18 = vector.load %arg6[%c0_12, %c0_13] : memref<256x4xbf16, #tpu.memory_space<vmem>>, vector<256x4xbf16>
    %cst_14 = arith.constant dense<0.000000e+00> : vector<16x4xf32>
    %19 = tpu.matmul %17, %18, %cst_14 {dimension_numbers = #tpu.dot_dimension_numbers<[1], [0], [0], [1], [0, 0, 1, 1], [], []>} : vector<16x256xbf16>, vector<256x4xbf16>, vector<16x4xf32> -> vector<16x4xf32>
    %c0_15 = arith.constant 0 : index
    %c0_16 = arith.constant 0 : index
    %20 = vector.load %arg7[%c0_15, %c0_16] : memref<1x4xf32, #tpu.memory_space<vmem>>, vector<1x4xf32>
    %21 = vector.broadcast %20 : vector<1x4xf32> to vector<16x4xf32>
    %22 = arith.addf %19, %21 : vector<16x4xf32>
    %c0_17 = arith.constant 0 : index
    %c0_18 = arith.constant 0 : index
    %23 = vector.load %arg10[%c0_17, %c0_18] : memref<16x4xf32, #tpu.memory_space<vmem>>, vector<16x4xf32>
    tpu.vector_store %arg10[%c0_17, %c0_18], %22 {strides = array<i32>} : memref<16x4xf32, #tpu.memory_space<vmem>>, vector<16x4xf32>,
    %c0_19 = arith.constant 0 : index
    %c0_20 = arith.constant 0 : index
    %24 = vector.load %arg8[%c0_19, %c0_20] : memref<256x4xbf16, #tpu.memory_space<vmem>>, vector<256x4xbf16>
    %cst_21 = arith.constant dense<0.000000e+00> : vector<16x4xf32>
    %25 = tpu.matmul %17, %24, %cst_21 {dimension_numbers = #tpu.dot_dimension_numbers<[1], [0], [0], [1], [0, 0, 1, 1], [], []>} : vector<16x256xbf16>, vector<256x4xbf16>, vector<16x4xf32> -> vector<16x4xf32>
    %c0_22 = arith.constant 0 : index
    %c0_23 = arith.constant 0 : index
    %26 = vector.load %arg9[%c0_22, %c0_23] : memref<1x4xf32, #tpu.memory_space<vmem>>, vector<1x4xf32>
    %27 = vector.broadcast %26 : vector<1x4xf32> to vector<16x4xf32>
    %28 = arith.addf %25, %27 : vector<16x4xf32>
    %cst_24 = arith.constant -2.000000e+01 : f32
    %cst_25 = arith.constant 2.000000e+00 : f32
    %29 = vector.broadcast %cst_24 : f32 to vector<16x4xf32>
    %30 = arith.maximumf %29, %28 : vector<16x4xf32>
    %31 = vector.broadcast %cst_25 : f32 to vector<16x4xf32>
    %32 = arith.minimumf %31, %30 : vector<16x4xf32>
    %c0_26 = arith.constant 0 : index
    %c0_27 = arith.constant 0 : index
    %33 = vector.load %arg11[%c0_26, %c0_27] : memref<16x4xf32, #tpu.memory_space<vmem>>, vector<16x4xf32>
    tpu.vector_store %arg11[%c0_26, %c0_27], %32 {strides = array<i32>} : memref<16x4xf32, #tpu.memory_space<vmem>>, vector<16x4xf32>,
    return
  }
  func.func @transform_0(%arg0: i32) -> (i32, i32) {
    %c0_i32 = arith.constant 0 : i32
    %c0_i32_0 = arith.constant 0 : i32
    return %arg0, %c0_i32 : i32, i32
  }
  func.func @transform_1(%arg0: i32) -> (i32, i32) {
    %c0_i32 = arith.constant 0 : i32
    %c0_i32_0 = arith.constant 0 : i32
    %c0_i32_1 = arith.constant 0 : i32
    return %c0_i32, %c0_i32_0 : i32, i32
  }
  func.func @transform_2(%arg0: i32) -> (i32, i32) {
    %c0_i32 = arith.constant 0 : i32
    %c0_i32_0 = arith.constant 0 : i32
    %c0_i32_1 = arith.constant 0 : i32
    return %c0_i32, %c0_i32_0 : i32, i32
  }
  func.func @transform_3(%arg0: i32) -> (i32, i32) {
    %c0_i32 = arith.constant 0 : i32
    %c0_i32_0 = arith.constant 0 : i32
    %c0_i32_1 = arith.constant 0 : i32
    return %c0_i32, %c0_i32_0 : i32, i32
  }
  func.func @transform_4(%arg0: i32) -> (i32, i32) {
    %c0_i32 = arith.constant 0 : i32
    %c0_i32_0 = arith.constant 0 : i32
    %c0_i32_1 = arith.constant 0 : i32
    return %c0_i32, %c0_i32_0 : i32, i32
  }
  func.func @transform_5(%arg0: i32) -> (i32, i32) {
    %c0_i32 = arith.constant 0 : i32
    %c0_i32_0 = arith.constant 0 : i32
    %c0_i32_1 = arith.constant 0 : i32
    return %c0_i32, %c0_i32_0 : i32, i32
  }
  func.func @transform_6(%arg0: i32) -> (i32, i32) {
    %c0_i32 = arith.constant 0 : i32
    %c0_i32_0 = arith.constant 0 : i32
    %c0_i32_1 = arith.constant 0 : i32
    return %c0_i32, %c0_i32_0 : i32, i32
  }
  func.func @transform_7(%arg0: i32) -> (i32, i32) {
    %c0_i32 = arith.constant 0 : i32
    %c0_i32_0 = arith.constant 0 : i32
    %c0_i32_1 = arith.constant 0 : i32
    return %c0_i32, %c0_i32_0 : i32, i32
  }
  func.func @transform_8(%arg0: i32) -> (i32, i32) {
    %c0_i32 = arith.constant 0 : i32
    %c0_i32_0 = arith.constant 0 : i32
    %c0_i32_1 = arith.constant 0 : i32
    return %c0_i32, %c0_i32_0 : i32, i32
  }
  func.func @transform_9(%arg0: i32) -> (i32, i32) {
    %c0_i32 = arith.constant 0 : i32
    %c0_i32_0 = arith.constant 0 : i32
    return %arg0, %c0_i32 : i32, i32
  }
  func.func @transform_10(%arg0: i32) -> (i32, i32) {
    %c0_i32 = arith.constant 0 : i32
    %c0_i32_0 = arith.constant 0 : i32
    return %arg0, %c0_i32 : i32, i32
  }
}

</mosaic_0001>

<bundles_post_ra>
// kernel: tpu_custom_call.1
= control target key start
LH: loop header
LB: loop body
LE: loop exit
PB: predicated region body
PF: predicated region fallthrough
CT: control target
= control target key end

     0   :  { %16 = vsyncpa [#allocation3], 0  ;;  %s1321_s0 = inlined_call_operand.vmem [shape: f32[16,16], index: 0, kind: input, shape index: {}]   ;;  %s1322_s1 = inlined_call_operand.hbm [shape: bf16[16,256], index: 1, kind: input, shape index: {}]   ;;  %s1323_s2 = inlined_call_operand.vmem [shape: f32[1,256], index: 2, kind: input, shape index: {}]   ;;  %s1324_s3 = inlined_call_operand.vmem [shape: bf16[256,256], index: 3, kind: input, shape index: {}]   ;;  %s1325_s4 = inlined_call_operand.hbm [shape: f32[1,256], index: 4, kind: input, shape index: {}]   ;;  %s1326_s5 = inlined_call_operand.vmem [shape: bf16[256,4], index: 5, kind: input, shape index: {}]   ;;  %s1327_s6 = inlined_call_operand.vmem [shape: f32[1,4], index: 6, kind: input, shape index: {}]   ;;  %s1328_s7 = inlined_call_operand.vmem [shape: bf16[256,4], index: 7, kind: input, shape index: {}]   ;;  %s1329_s8 = inlined_call_operand.vmem [shape: f32[1,4], index: 8, kind: input, shape index: {}]   ;;  %s1330_s9 = inlined_call_operand.vmem [shape: f32[16,4], index: 9, kind: output, shape index: {0}]   ;;  %s1331_s10 = inlined_call_operand.vmem [shape: f32[16,4], index: 10, kind: output, shape index: {1}]  }
   0x1   :  { %17 = vsyncpa [#allocation5], 0  ;;  %s1014_s13 = smov [#allocation2]   ;;  %s966_s17 = scalar_lea.hbm %s1322_s1, 256 }
   0x2   :  { %s25_s14 = sshll.u32 %s1014_s13, 4  ;;  %p967_p0 = scmp.ne.s32.totalorder %s1322_s1, %s966_s17  ;;  %s26_s14 = int_to_ptr.vmem [resolvable:$true] %s25_s14 }
   0x3   :  { %p970_p1 = scmp.lt.u32.totalorder %s966_s17, %s1322_s1 }
   0x5   :  { %p972_p2 = pnand %p970_p1, %p967_p0 }
   0x7   :  { %975 = shalt.err (!%p972_p2)
}
   0x8   :  { %s976_s22 = scalar_lea.vmem %s26_s14, 256  ;;  %p981_p4 = scmp.lt.s32.totalorder %s26_s14, %s26_s14 }
   0x9   :  { %p977_p3 = scmp.ne.s32.totalorder %s26_s14, %s976_s22  ;;  %p982_p5 = scmp.lt.s32.totalorder %s976_s22, %s976_s22 }
   0xb   :  { %p983_p6 = por %p982_p5, %p981_p4 }
   0xd   :  { %p984_p7 = pnand %p983_p6, %p977_p3 }
   0xf   :  { %987 = shalt.err (!%p984_p7)
}
  0x10   :  { %s1015_s23 = smov 128   ;;  %s1016_s24 = smov 8  }
  0x11   :  { %31 = dma.hbm_to_vmem [thread:$0]  %s1322_s1, 256, %s26_s14, [#allocation3], %s1015_s23, %s1015_s23, %s1016_s24  }
  0x12   :  { %s1017_s27 = smov [#allocation4]   ;;  %s988_s11 = scalar_lea.hbm %s1325_s4, 32 }
  0x13   :  { %s42_s28 = sshll.u32 %s1017_s27, 4  ;;  %p989_p8 = scmp.ne.s32.totalorder %s1325_s4, %s988_s11  ;;  %s43_s28 = int_to_ptr.vmem [resolvable:$true] %s42_s28 }
  0x14   :  { %p992_p9 = scmp.lt.u32.totalorder %s988_s11, %s1325_s4 }
  0x16   :  { %p994_p10 = pnand %p992_p9, %p989_p8 }
  0x18   :  { %997 = shalt.err (!%p994_p10)
}
  0x19   :  { %s998_s17 = scalar_lea.vmem %s43_s28, 32  ;;  %p1003_p12 = scmp.lt.s32.totalorder %s43_s28, %s43_s28 }
  0x1a   :  { %p999_p11 = scmp.ne.s32.totalorder %s43_s28, %s998_s17  ;;  %p1004_p13 = scmp.lt.s32.totalorder %s998_s17, %s998_s17 }
  0x1c   :  { %p1005_p0 = por %p1004_p13, %p1003_p12 }
  0x1e   :  { %p1006_p1 = pnand %p1005_p0, %p999_p11 }
  0x20   :  { %1009 = shalt.err (!%p1006_p1)
}
  0x21   :  { %45 = dma.hbm_to_vmem [thread:$0]  %s1325_s4, 32, %s43_s28, [#allocation5]  }
  0x22   :  { %1010 = dma.done.wait [#allocation3], 256  }
  0x23   :  { %1011 = vsyncadd [#allocation3], 4294967040 }
  0x24   :  { %1012 = dma.done.wait [#allocation5], 32  }
  0x25   :  { %1013 = vsyncadd [#allocation5], 4294967264  ;;  %v1018_v0 = vmov 0   ;;  %v883_v1 = vld [vmem:[#allocation2 + $0x4] ss:$8 sps:$4 sm:$0xff]   ;;  %vm88_vm0 = vcmask 130048   ;;  %v68_v50 = vlaneseq }
  0x26   :  { %124 = vmatprep.mubr.bf16.mxu0 %v1018_v0  ;;  %v885_v2 = vld [vmem:[#allocation2] ss:$8 sps:$4 sm:$0xff]   ;;  %92 = vmatprep.subr.bf16.mxu0 %v883_v1  ;;  %v886_v6 = vld [vmem:[%s1324_s3 + $0x4] ss:$8 sps:$4 sm:$0xff]   ;;  %v889_v8 = vld [vmem:[%s1324_s3 + $0x14] ss:$8 sps:$4 sm:$0xff]  }
  0x27   :  { %v61_v3 = vld [vmem:[%s1321_s0] sm:$0xff]  ;;  %v62_v4 = vld [vmem:[%s1321_s0 + $0x8] sm:$0xff]  ;;  %93 = vmatpush1.bf16.msra.mxu0 %v885_v2  ;;  %345 = vmatprep.subr.bf16.mxu1 %v886_v6  ;;  %v891_v9 = vld [vmem:[%s1324_s3 + $0x10] ss:$8 sps:$4 sm:$0xff]   ;;  %v69_v51 = vshrl.u32 %v68_v50, 7  ;;  %vm570_vm1 = vcmask 31744  }
  0x28   :  { %v63_v5 = vpack.c.bf16 %v62_v4, %v61_v3  ;;  %v888_v7 = vld [vmem:[%s1324_s3] ss:$8 sps:$4 sm:$0xff]   ;;  %v892_v10 = vld [vmem:[%s1324_s3 + $0x24] ss:$8 sps:$4 sm:$0xff]   ;;  %v895_v12 = vld [vmem:[%s1324_s3 + $0x34] ss:$8 sps:$4 sm:$0xff]  }
  0x29   :  { %346 = vmatpush1.bf16.msra.mxu1 %v888_v7  ;;  %v894_v11 = vld [vmem:[%s1324_s3 + $0x20] ss:$8 sps:$4 sm:$0xff]   ;;  %v897_v13 = vld [vmem:[%s1324_s3 + $0x30] ss:$8 sps:$4 sm:$0xff]   ;;  %v898_v14 = vld [vmem:[%s1324_s3 + $0x44] ss:$8 sps:$4 sm:$0xff]  }
  0x2a   :  { %767 = vmatmul.mubr.msk.bf16.vlgmr.msra.gmra.mrb[0].mxu0 %vm88_vm0, %v63_v5  ;;  %347 = vmatprep.subr.bf16.mxu1 %v889_v8  ;;  %v900_v15 = vld [vmem:[%s1324_s3 + $0x40] ss:$8 sps:$4 sm:$0xff]   ;;  %v901_v16 = vld [vmem:[%s1324_s3 + $0x54] ss:$8 sps:$4 sm:$0xff]   ;;  %v903_v17 = vld [vmem:[%s1324_s3 + $0x50] ss:$8 sps:$4 sm:$0xff]  }
  0x2b   :  { %v904_v18 = vld [vmem:[%s1324_s3 + $0x64] ss:$8 sps:$4 sm:$0xff]   ;;  %v906_v19 = vld [vmem:[%s1324_s3 + $0x60] ss:$8 sps:$4 sm:$0xff]   ;;  %v907_v20 = vld [vmem:[%s1324_s3 + $0x74] ss:$8 sps:$4 sm:$0xff]  }
  0x2c   :  { %v909_v21 = vld [vmem:[%s1324_s3 + $0x70] ss:$8 sps:$4 sm:$0xff]   ;;  %v910_v22 = vld [vmem:[%s1324_s3 + $0x84] ss:$8 sps:$4 sm:$0xff]   ;;  %v912_v23 = vld [vmem:[%s1324_s3 + $0x80] ss:$8 sps:$4 sm:$0xff]  }
  0x2d   :  { %348 = vmatpush1.bf16.msra.mxu1 %v891_v9  ;;  %v913_v24 = vld [vmem:[%s1324_s3 + $0x94] ss:$8 sps:$4 sm:$0xff]   ;;  %v915_v25 = vld [vmem:[%s1324_s3 + $0x90] ss:$8 sps:$4 sm:$0xff]   ;;  %v916_v26 = vld [vmem:[%s1324_s3 + $0xa4] ss:$8 sps:$4 sm:$0xff]  }
  0x2e   :  { %349 = vmatprep.subr.bf16.mxu1 %v892_v10  ;;  %v918_v27 = vld [vmem:[%s1324_s3 + $0xa0] ss:$8 sps:$4 sm:$0xff]   ;;  %v919_v28 = vld [vmem:[%s1324_s3 + $0xb4] ss:$8 sps:$4 sm:$0xff]   ;;  %v921_v29 = vld [vmem:[%s1324_s3 + $0xb0] ss:$8 sps:$4 sm:$0xff]  }
  0x2f   :  { %v922_v30 = vld [vmem:[%s1324_s3 + $0xc4] ss:$8 sps:$4 sm:$0xff]   ;;  %v924_v31 = vld [vmem:[%s1324_s3 + $0xc0] ss:$8 sps:$4 sm:$0xff]   ;;  %v925_v32 = vld [vmem:[%s1324_s3 + $0xd4] ss:$8 sps:$4 sm:$0xff]  }
  0x30   :  { %v927_v33 = vld [vmem:[%s1324_s3 + $0xd0] ss:$8 sps:$4 sm:$0xff]   ;;  %v928_v34 = vld [vmem:[%s1324_s3 + $0xe4] ss:$8 sps:$4 sm:$0xff]   ;;  %v930_v35 = vld [vmem:[%s1324_s3 + $0xe0] ss:$8 sps:$4 sm:$0xff]  }
  0x31   :  { %350 = vmatpush1.bf16.msra.mxu1 %v894_v11  ;;  %v931_v36 = vld [vmem:[%s1324_s3 + $0xf4] ss:$8 sps:$4 sm:$0xff]   ;;  %v933_v37 = vld [vmem:[%s1324_s3 + $0xf0] ss:$8 sps:$4 sm:$0xff]   ;;  %v934_v38 = vld [vmem:[%s1326_s5 + $0x40] sm:$0xff]   ;;  %v70_v52 = vsub.s32 0, %v69_v51 }
  0x32   :  { %351 = vmatprep.subr.bf16.mxu1 %v895_v12  ;;  %v935_v39 = vld [vmem:[%s1326_s5] sm:$0xff]   ;;  %v936_v40 = vld [vmem:[%s1326_s5 + $0x48] sm:$0xff]   ;;  %834 = vmatprep.subr.bf16.mxu0 %v934_v38  ;;  %v938_v42 = vld [vmem:[%s1326_s5 + $0x50] sm:$0xff]   ;;  %v74_v54 = vsub.s32 1, %v69_v51 }
  0x33   :  { %835 = vmatpush3.bf16.msra.mxu0 %v935_v39  ;;  %v937_v41 = vld [vmem:[%s1326_s5 + $0x8] sm:$0xff]   ;;  %v939_v43 = vld [vmem:[%s1326_s5 + $0x10] sm:$0xff]   ;;  %v940_v44 = vld [vmem:[%s1326_s5 + $0x58] sm:$0xff]  }
  0x34   :  { %836 = vmatprep.subr.bf16.mxu0 %v936_v40  ;;  %v941_v45 = vld [vmem:[%s1326_s5 + $0x18] sm:$0xff]   ;;  %v942_v46 = vld [vmem:[%s1326_s5 + $0x60] sm:$0xff]   ;;  %v944_v48 = vld [vmem:[%s1326_s5 + $0x68] sm:$0xff]  }
  0x35   :  { %352 = vmatpush1.bf16.msra.mxu1 %v897_v13  ;;  %v943_v47 = vld [vmem:[%s1326_s5 + $0x20] sm:$0xff]   ;;  %v945_v49 = vld [vmem:[%s1326_s5 + $0x28] sm:$0xff]   ;;  %v946_v7 = vld [vmem:[%s1326_s5 + $0x70] sm:$0xff]  }
  0x36   :  { %353 = vmatprep.subr.bf16.mxu1 %v898_v14  ;;  %v66_v53 = vld [vmem:[%s1323_s2] sm:$0x3]  ;;  %v947_v8 = vld [vmem:[%s1326_s5 + $0x30] sm:$0xff]   ;;  %v948_v9 = vld [vmem:[%s1326_s5 + $0x78] sm:$0xff]  }
  0x37   :  { %837 = vmatpush3.bf16.msra.mxu0 %v937_v41  ;;  %v71_v55 = vrot.slane %v66_v53, %v70_v52  ;;  %v75_v56 = vrot.slane %v66_v53, %v74_v54  ;;  %v949_v10 = vld [vmem:[%s1326_s5 + $0x38] sm:$0xff]   ;;  %v950_v11 = vld [vmem:[%s1328_s7 + $0x40] sm:$0xff]   ;;  %v173_v12 = vld [vmem:[#allocation4] sm:$0x3] }
  0x38   :  { %838 = vmatprep.subr.bf16.mxu0 %v938_v42  ;;  %v178_v13 = vrot.slane %v173_v12, %v70_v52  ;;  %v182_v14 = vrot.slane %v173_v12, %v74_v54  ;;  %v960_v38 = vld [vmem:[%s1328_s7 + $0x68] sm:$0xff]   ;;  %v962_v40 = vld [vmem:[%s1328_s7 + $0x70] sm:$0xff]   ;;  %v964_v42 = vld [vmem:[%s1328_s7 + $0x78] sm:$0xff]  }
  0x39   :  { %354 = vmatpush1.bf16.msra.mxu1 %v900_v15  ;;  %v961_v39 = vld [vmem:[%s1328_s7 + $0x28] sm:$0xff]   ;;  %v963_v41 = vld [vmem:[%s1328_s7 + $0x30] sm:$0xff]   ;;  %v817_v54 = vld [vmem:[%s1329_s8] ss:$0 sm:$0xff] }
  0x3a   :  { %355 = vmatprep.subr.bf16.mxu1 %v901_v16 }
  0x3b   :  { %839 = vmatpush3.bf16.msra.mxu0 %v939_v43  ;;  %v965_v43 = vld [vmem:[%s1328_s7 + $0x38] sm:$0xff]  }
  0x3c   :  { %840 = vmatprep.subr.bf16.mxu0 %v940_v44 }
  0x3d   :  { %356 = vmatpush1.bf16.msra.mxu1 %v903_v17 }
  0x3e   :  { %357 = vmatprep.subr.bf16.mxu1 %v904_v18 }
  0x3f   :  { %841 = vmatpush3.bf16.msra.mxu0 %v941_v45  ;;  %v800_v45 = vld [vmem:[%s1327_s6] ss:$0 sm:$0xff] }
  0x40   :  { %842 = vmatprep.subr.bf16.mxu0 %v942_v46 }
  0x41   :  { %358 = vmatpush1.bf16.msra.mxu1 %v906_v19 }
  0x42   :  { %359 = vmatprep.subr.bf16.mxu1 %v907_v20 }
  0x43   :  { %843 = vmatpush3.bf16.msra.mxu0 %v943_v47 }
  0x44   :  { %844 = vmatprep.subr.bf16.mxu0 %v944_v48 }
  0x45   :  { %360 = vmatpush1.bf16.msra.mxu1 %v909_v21 }
  0x46   :  { %361 = vmatprep.subr.bf16.mxu1 %v910_v22 }
  0x47   :  { %845 = vmatpush3.bf16.msra.mxu0 %v945_v49 }
  0x48   :  { %846 = vmatprep.subr.bf16.mxu0 %v946_v7 }
  0x49   :  { %362 = vmatpush1.bf16.msra.mxu1 %v912_v23 }
  0x4a   :  { %363 = vmatprep.subr.bf16.mxu1 %v913_v24 }
  0x4b   :  { %847 = vmatpush3.bf16.msra.mxu0 %v947_v8 }
  0x4c   :  { %848 = vmatprep.subr.bf16.mxu0 %v948_v9 }
  0x4d   :  { %364 = vmatpush1.bf16.msra.mxu1 %v915_v25 }
  0x4e   :  { %365 = vmatprep.subr.bf16.mxu1 %v916_v26 }
  0x4f   :  { %849 = vmatpush3.bf16.msra.mxu0 %v949_v10 }
  0x50   :  { %856 = vmatprep.subr.bf16.mxu0 %v950_v11 }
  0x51   :  { %366 = vmatpush1.bf16.msra.mxu1 %v918_v27 }
  0x52   :  { %367 = vmatprep.subr.bf16.mxu1 %v919_v28 }
  0x55   :  { %368 = vmatpush1.bf16.msra.mxu1 %v921_v29  ;;  %v951_v29 = vld [vmem:[%s1328_s7] sm:$0xff]  }
  0x56   :  { %369 = vmatprep.subr.bf16.mxu1 %v922_v30  ;;  %v952_v30 = vld [vmem:[%s1328_s7 + $0x48] sm:$0xff]  }
  0x59   :  { %370 = vmatpush1.bf16.msra.mxu1 %v924_v31  ;;  %v953_v31 = vld [vmem:[%s1328_s7 + $0x8] sm:$0xff]  }
  0x5a   :  { %371 = vmatprep.subr.bf16.mxu1 %v925_v32  ;;  %v954_v32 = vld [vmem:[%s1328_s7 + $0x50] sm:$0xff]  }
  0x5d   :  { %372 = vmatpush1.bf16.msra.mxu1 %v927_v33  ;;  %v955_v33 = vld [vmem:[%s1328_s7 + $0x10] sm:$0xff]  }
  0x5e   :  { %373 = vmatprep.subr.bf16.mxu1 %v928_v34  ;;  %v956_v34 = vld [vmem:[%s1328_s7 + $0x58] sm:$0xff]  }
  0x61   :  { %374 = vmatpush1.bf16.msra.mxu1 %v930_v35  ;;  %v957_v35 = vld [vmem:[%s1328_s7 + $0x18] sm:$0xff]  }
  0x62   :  { %375 = vmatprep.subr.bf16.mxu1 %v931_v36  ;;  %v958_v36 = vld [vmem:[%s1328_s7 + $0x60] sm:$0xff]  }
  0x65   :  { %376 = vmatpush1.bf16.msra.mxu1 %v933_v37  ;;  %v959_v37 = vld [vmem:[%s1328_s7 + $0x20] sm:$0xff]  }
  0xfd   :  { %v126_v57 = vpop.f32.mrb[0].mxu0 }
  0xfe   :  { %v127_v58 = vadd.f32 %v126_v57, %v71_v55  ;;  %v128_v59 = vpop.f32.mrb[1].mxu0 }
  0xff   :  { %v129_v60 = vadd.f32 %v128_v59, %v75_v56  ;;  %v130_v61 = vpop.f32.mrb[2].mxu0 }
 0x100   :  { %v131_v62 = vadd.f32 %v130_v61, %v71_v55  ;;  %v132_v63 = vpop.f32.mrb[3].mxu0  ;;  %v135_v1 = vmax.f32 %v127_v58, 0.0 }
 0x101   :  { %v133_v0 = vadd.f32 %v132_v63, %v75_v56  ;;  %v136_v3 = vmax.f32 %v129_v60, 0.0 }
 0x102   :  { %v137_v2 = vmax.f32 %v131_v62, 0.0 }
 0x103   :  { %v138_v4 = vmax.f32 %v133_v0, 0.0 }
 0x104   :  { %v139_v5 = vpack.c.bf16 %v137_v2, %v135_v1 }
 0x105   :  { %v140_v6 = vpack.c.bf16 %v138_v4, %v136_v3 }
 0x107   :  { %377 = vmatprep.mubr.bf16.mxu1 %v140_v6 }
 0x108   :  { %378 = vmatmul.mubr.bf16.vlgmr.msra.gmra.mrb[0].mxu1 %v139_v5 }
 0x1db   :  { %v379_v15 = vpop.f32.mrb[0].mxu1 }
 0x1dc   :  { %v380_v16 = vadd.f32 %v379_v15, %v178_v13  ;;  %v381_v17 = vpop.f32.mrb[1].mxu1 }
 0x1dd   :  { %v382_v18 = vadd.f32 %v381_v17, %v182_v14  ;;  %v383_v19 = vpop.f32.mrb[2].mxu1 }
 0x1de   :  { %v384_v20 = vadd.f32 %v383_v19, %v178_v13  ;;  %v385_v21 = vpop.f32.mrb[3].mxu1  ;;  %v388_v23 = vmax.f32 %v380_v16, 0.0 }
 0x1df   :  { %v386_v22 = vadd.f32 %v385_v21, %v182_v14  ;;  %v389_v25 = vmax.f32 %v382_v18, 0.0 }
 0x1e0   :  { %v390_v24 = vmax.f32 %v384_v20, 0.0 }
 0x1e1   :  { %v391_v26 = vmax.f32 %v386_v22, 0.0 }
 0x1e2   :  { %v392_v27 = vpack.c.bf16 %v390_v24, %v388_v23 }
 0x1e3   :  { %v393_v28 = vpack.c.bf16 %v391_v26, %v389_v25 }
 0x1e5   :  { %561 = vmatprep.mubr.bf16.mxu0 %v393_v28 }
 0x1e6   :  { %562 = vmatmul.mubr.bf16.vlgmr.msra.gmra.mrb[4].mxu0 %v392_v27 }
 0x1e7   :  { %857 = vmatpush3.bf16.msra.mxu0 %v951_v29  ;;  %740 = vmatprep.mubr.bf16.mxu0 %v393_v28 }
 0x1e8   :  { %858 = vmatprep.subr.bf16.mxu0 %v952_v30 }
 0x1eb   :  { %859 = vmatpush3.bf16.msra.mxu0 %v953_v31 }
 0x1ec   :  { %860 = vmatprep.subr.bf16.mxu0 %v954_v32 }
 0x1ef   :  { %861 = vmatpush3.bf16.msra.mxu0 %v955_v33 }
 0x1f0   :  { %862 = vmatprep.subr.bf16.mxu0 %v956_v34 }
 0x1f3   :  { %863 = vmatpush3.bf16.msra.mxu0 %v957_v35 }
 0x1f4   :  { %864 = vmatprep.subr.bf16.mxu0 %v958_v36 }
 0x1f7   :  { %865 = vmatpush3.bf16.msra.mxu0 %v959_v37 }
 0x1f8   :  { %866 = vmatprep.subr.bf16.mxu0 %v960_v38 }
 0x1fb   :  { %867 = vmatpush3.bf16.msra.mxu0 %v961_v39 }
 0x1fc   :  { %868 = vmatprep.subr.bf16.mxu0 %v962_v40 }
 0x1ff   :  { %869 = vmatpush3.bf16.msra.mxu0 %v963_v41 }
 0x200   :  { %870 = vmatprep.subr.bf16.mxu0 %v964_v42 }
 0x203   :  { %871 = vmatpush3.bf16.msra.mxu0 %v965_v43 }
 0x206   :  { %741 = vmatmul.mubr.bf16.vlgmr.msra.gmra.mrb[8].mxu0 %v392_v27 }
 0x2b9   :  { %v850_v44 = vpop.f32.mrb[4].mxu0 }
 0x2ba   :  { %v851_v46 = vpop.f32.mrb[5].mxu0 }
 0x2bb   :  { %v852_v47 = vadd.f32 %v851_v46, %v850_v44  ;;  %v853_v48 = vpop.f32.mrb[6].mxu0 }
 0x2bc   :  { %v854_v49 = vpop.f32.mrb[7].mxu0 }
 0x2bd   :  { %v564_v50 = vadd.f32 %v852_v47, %v800_v45  ;;  %v855_v51 = vadd.f32 %v854_v49, %v853_v48 }
 0x2bf   :  { %571 = vst.msk [vmem:[%s1330_s9] sm:$0xff] %vm570_vm1, %v564_v50  ;;  %v567_v52 = vadd.f32 %v855_v51, %v800_v45 }
 0x2c1   :  { %572 = vst.msk [vmem:[%s1330_s9 + $0x8] sm:$0xff] %vm570_vm1, %v567_v52 }
 0x2d9   :  { %v872_v53 = vpop.f32.mrb[8].mxu0 }
 0x2da   :  { %v873_v55 = vpop.f32.mrb[9].mxu0 }
 0x2db   :  { %v874_v56 = vadd.f32 %v873_v55, %v872_v53  ;;  %v875_v57 = vpop.f32.mrb[10].mxu0 }
 0x2dc   :  { %v876_v58 = vpop.f32.mrb[11].mxu0 }
 0x2dd   :  { %v743_v59 = vadd.f32 %v874_v56, %v817_v54  ;;  %v877_v60 = vadd.f32 %v876_v58, %v875_v57 }
 0x2df   :  { %v749_v61 = vmax.f32 %v743_v59, -20.0  ;;  %v746_v62 = vadd.f32 %v877_v60, %v817_v54 }
 0x2e1   :  { %v751_v63 = vmin.f32 %v749_v61, 2.0  ;;  %v750_v0 = vmax.f32 %v746_v62, -20.0 }
 0x2e3   :  { %753 = vst.msk [vmem:[%s1331_s10] sm:$0xff] %vm570_vm1, %v751_v63  ;;  %v752_v1 = vmin.f32 %v750_v0, 2.0 }
 0x2e5   :  { %754 = vst.msk [vmem:[%s1331_s10 + $0x8] sm:$0xff] %vm570_vm1, %v752_v1 }
 0x2e6   :  { %763 = vsyncpa [#allocation3], 1 }
 0x2e7   :  { %764 = vsyncpa [#allocation5], 1 }

</bundles_post_ra>
